<compile_context>
chip_gen: v5e
topology: v5e:2x2
jax: 0.10.0
libtpu: 0.0.40
codegen_flags: <defaults>
</compile_context>

<pallas_src>
import math

import jax
import jax.numpy as jnp
import numpy as np
from jax.experimental import pallas as pl
from jax.experimental.pallas import tpu as pltpu  # noqa: F401  (TPU backend)

D_MODEL = 32
N_HEAD = 4
HEAD_DIM = D_MODEL // N_HEAD
THETA = 10000.0
MAX_LEN = 64
B = 2
S = 16


def causal_mhsa_rope(x, token_positions, wq, wk, wv, wo,
                     *, n_head=N_HEAD, theta=THETA, max_len=MAX_LEN):
    b, s, d = x.shape
    hd = d // n_head
    bs = b * s

    # ---------------- host-side precompute (tiny, one-off) ----------------
    # RoPE angle tables (interleaved even/odd pairs), gathered at positions.
    pos = jnp.arange(max_len, dtype=jnp.float32)[:, None]
    div_term = jnp.exp(jnp.arange(0, hd, 2, dtype=jnp.float32)
                       * (-math.log(theta) / hd))
    ang = (pos * div_term)[token_positions]                       # [S, hd//2]
    cos_hd = jnp.repeat(jnp.cos(ang), 2, axis=-1)                 # [S, hd]
    sign = jnp.tile(jnp.array([-1.0, 1.0], jnp.float32), hd // 2)
    sin_hd = jnp.repeat(jnp.sin(ang), 2, axis=-1) * sign          # [S, hd]
    cos_bsd = jnp.tile(cos_hd, (b, n_head))                       # [B*S, D]
    sin_bsd = jnp.tile(sin_hd, (b, n_head))                       # [B*S, D]

    # Block-diagonal pair-swap matrix P:  (x @ P)[2i] = x[2i+1], (x@P)[2i+1]=x[2i]
    psw = np.zeros((d, d), np.float32)
    for i in range(0, d, 2):
        psw[i, i + 1] = 1.0
        psw[i + 1, i] = 1.0
    psw = jnp.asarray(psw)

    # Fold 1/sqrt(hd) into Wq (RoPE is linear, scale commutes) and fold the
    # pair-swap into the weights; concatenate everything into one wide matmul.
    wq_s = (wq * (hd ** -0.5)).astype(jnp.float32)
    wcat = jnp.concatenate(
        [wq_s, wq_s @ psw, wk, wk @ psw, wv], axis=1).astype(jnp.float32)  # [D, 5D]

    # Wo grouped per head: out = sum_h ctx_h @ wo_r[h]
    wo_r = wo.reshape(n_head, hd, d).astype(jnp.float32)          # [H, hd, D]

    # Block-diagonal (per batch element) causal additive mask over merged rows.
    ridx = jnp.arange(bs)
    same_b = (ridx[:, None] // s) == (ridx[None, :] // s)
    causal = (ridx[None, :] % s) <= (ridx[:, None] % s)
    mask_add = jnp.where(same_b & causal,
                         jnp.float32(0.0), jnp.float32(-1e30))    # [BS, BS]

    x2d = x.reshape(bs, d).astype(jnp.float32)

    # ------------------------------ kernel --------------------------------
    def kernel(x_ref, wcat_ref, cos_ref, sin_ref, wo_ref, mask_ref, o_ref):
        # One wide projection: [BS, D] @ [D, 5D] -> [BS, 5D]
        proj = jnp.dot(x_ref[...], wcat_ref[...],
                       preferred_element_type=jnp.float32)

        cos = cos_ref[...]
        sin = sin_ref[...]
        # Fused all-head RoPE: rot(t) = t*cos + swap_pairs(t)*sin_signed,
        # with swap_pairs already folded into the projection weights.
        q = proj[:, 0 * d:1 * d] * cos + proj[:, 1 * d:2 * d] * sin
        k = proj[:, 2 * d:3 * d] * cos + proj[:, 3 * d:4 * d] * sin
        v = proj[:, 4 * d:5 * d]

        def heads(t):                                             # [BS,D]->[H,BS,hd]
            return jnp.stack(
                [t[:, h * hd:(h + 1) * hd] for h in range(n_head)], axis=0)

        qh, kh, vh = heads(q), heads(k), heads(v)

        # Head-batched attention over the merged batch; batch separation and
        # causality are both enforced by the additive mask.
        scores = jnp.einsum('hqd,hkd->hqk', qh, kh,
                            preferred_element_type=jnp.float32)   # [H, BS, BS]
        scores = scores + mask_ref[...]
        m = jnp.max(scores, axis=-1, keepdims=True)
        p = jnp.exp(scores - m)
        denom = jnp.sum(p, axis=-1, keepdims=True)
        r = pl.reciprocal(denom, approx=True)                     # EUP slot
        r = r * (2.0 - denom * r)                                 # 1 Newton step
        p = p * r
        ctx = jnp.einsum('hqk,hkd->hqd', p, vh,
                         preferred_element_type=jnp.float32)      # [H, BS, hd]

        # Output projection without any lane concat: per-head matmul + sum.
        outh = jnp.einsum('hqd,hdm->hqm', ctx, wo_ref[...],
                          preferred_element_type=jnp.float32)     # [H, BS, D]
        o_ref[...] = jnp.sum(outh, axis=0)

    out2d = pl.pallas_call(
        kernel,
        out_shape=jax.ShapeDtypeStruct((bs, d), jnp.float32),
    )(x2d, wcat, cos_bsd, sin_bsd, wo_r, mask_add)

    return out2d.reshape(b, s, d)


def reference(x, token_positions, wq, wk, wv, wo):
    """Plain-JAX mirror of the PyTorch forward, for validation."""
    b, s, d = x.shape
    q = x @ wq
    k = x @ wk
    v = x @ wv
    q = q.reshape(b, s, N_HEAD, HEAD_DIM).transpose(0, 2, 1, 3)
    k = k.reshape(b, s, N_HEAD, HEAD_DIM).transpose(0, 2, 1, 3)
    v = v.reshape(b, s, N_HEAD, HEAD_DIM).transpose(0, 2, 1, 3)

    pos = jnp.arange(MAX_LEN, dtype=jnp.float32)[:, None]
    div_term = jnp.exp(jnp.arange(0, HEAD_DIM, 2, dtype=jnp.float32)
                       * (-math.log(THETA) / HEAD_DIM))
    ang = (pos * div_term)[token_positions]                       # [S, hd//2]
    cos, sin = jnp.cos(ang), jnp.sin(ang)

    def rope(t):
        te, to = t[..., 0::2], t[..., 1::2]
        re = te * cos - to * sin
        ro = te * sin + to * cos
        return jnp.stack([re, ro], axis=-1).reshape(t.shape)

    q, k = rope(q), rope(k)
    scores = jnp.einsum("bhqd,bhkd->bhqk", q, k) * HEAD_DIM ** (-0.5)
    mask = jnp.tril(jnp.ones((s, s), dtype=bool))
    scores = jnp.where(mask, scores, -jnp.inf)
    scores = scores - jnp.max(scores, axis=-1, keepdims=True)
    p = jnp.exp(scores)
    p = p / jnp.sum(p, axis=-1, keepdims=True)
    ctx = jnp.einsum("bhqk,bhkd->bhqd", p, v)
    ctx = ctx.transpose(0, 2, 1, 3).reshape(b, s, d)
    return ctx @ wo


if __name__ == "__main__":
    key = jax.random.PRNGKey(0)
    kx, kq, kk, kv, ko = jax.random.split(key, 5)

    std = math.sqrt(2.0 / (D_MODEL + D_MODEL))

    def trunc(k):
        return jax.random.truncated_normal(
            k, -3.0, 3.0, (D_MODEL, D_MODEL), jnp.float32) * std

    wq, wk, wv, wo = trunc(kq), trunc(kk), trunc(kv), trunc(ko)
    x = jax.random.normal(kx, (B, S, D_MODEL), dtype=jnp.float32)
    token_positions = jnp.arange(S, dtype=jnp.int32)

    out = causal_mhsa_rope(x, token_positions, wq, wk, wv, wo)
    out = jax.block_until_ready(out)

    ref = reference(x, token_positions, wq, wk, wv, wo)
    np.testing.assert_allclose(np.asarray(out), np.asarray(ref),
                               atol=1e-4, rtol=1e-4)
    print("KERNEL_OK")
</pallas_src>

<mosaic_0001>
module attributes {stable_mosaic.version = 11 : i64} {
  func.func @kernel(%arg0: memref<32x32xf32, #tpu.memory_space<vmem>>, %arg1: memref<32x160xf32, #tpu.memory_space<vmem>>, %arg2: memref<32x32xf32, #tpu.memory_space<vmem>>, %arg3: memref<32x32xf32, #tpu.memory_space<vmem>>, %arg4: memref<4x8x32xf32, #tpu.memory_space<vmem>>, %arg5: memref<32x32xf32, #tpu.memory_space<vmem>>, %arg6: memref<32x32xf32, #tpu.memory_space<vmem>>) attributes {dimension_semantics = [], scalar_prefetch = 0 : i64, scratch_operands = 0 : i64, tpu.core_type = #tpu.core_type<tc>} {
    %c0 = arith.constant 0 : index
    %c0_0 = arith.constant 0 : index
    %0 = vector.load %arg0[%c0, %c0_0] : memref<32x32xf32, #tpu.memory_space<vmem>>, vector<32x32xf32>
    %c0_1 = arith.constant 0 : index
    %c0_2 = arith.constant 0 : index
    %1 = vector.load %arg1[%c0_1, %c0_2] : memref<32x160xf32, #tpu.memory_space<vmem>>, vector<32x160xf32>
    %cst = arith.constant dense<0.000000e+00> : vector<32x160xf32>
    %2 = tpu.matmul %0, %1, %cst {dimension_numbers = #tpu.dot_dimension_numbers<[1], [0], [0], [1], [0, 0, 1, 1], [], []>} : vector<32x32xf32>, vector<32x160xf32>, vector<32x160xf32> -> vector<32x160xf32>
    %c0_3 = arith.constant 0 : index
    %c0_4 = arith.constant 0 : index
    %3 = vector.load %arg2[%c0_3, %c0_4] : memref<32x32xf32, #tpu.memory_space<vmem>>, vector<32x32xf32>
    %c0_5 = arith.constant 0 : index
    %c0_6 = arith.constant 0 : index
    %4 = vector.load %arg3[%c0_5, %c0_6] : memref<32x32xf32, #tpu.memory_space<vmem>>, vector<32x32xf32>
    %5 = vector.extract_strided_slice %2 {offsets = [0, 0], sizes = [32, 32], strides = [1, 1]} : vector<32x160xf32> to vector<32x32xf32>
    %6 = arith.mulf %5, %3 : vector<32x32xf32>
    %7 = vector.extract_strided_slice %2 {offsets = [0, 32], sizes = [32, 32], strides = [1, 1]} : vector<32x160xf32> to vector<32x32xf32>
    %8 = arith.mulf %7, %4 : vector<32x32xf32>
    %9 = arith.addf %6, %8 : vector<32x32xf32>
    %10 = vector.extract_strided_slice %2 {offsets = [0, 64], sizes = [32, 32], strides = [1, 1]} : vector<32x160xf32> to vector<32x32xf32>
    %11 = arith.mulf %10, %3 : vector<32x32xf32>
    %12 = vector.extract_strided_slice %2 {offsets = [0, 96], sizes = [32, 32], strides = [1, 1]} : vector<32x160xf32> to vector<32x32xf32>
    %13 = arith.mulf %12, %4 : vector<32x32xf32>
    %14 = arith.addf %11, %13 : vector<32x32xf32>
    %15 = vector.extract_strided_slice %2 {offsets = [0, 128], sizes = [32, 32], strides = [1, 1]} : vector<32x160xf32> to vector<32x32xf32>
    %16 = vector.extract_strided_slice %9 {offsets = [0, 0], sizes = [32, 8], strides = [1, 1]} : vector<32x32xf32> to vector<32x8xf32>
    %17 = vector.extract_strided_slice %9 {offsets = [0, 8], sizes = [32, 8], strides = [1, 1]} : vector<32x32xf32> to vector<32x8xf32>
    %18 = vector.extract_strided_slice %9 {offsets = [0, 16], sizes = [32, 8], strides = [1, 1]} : vector<32x32xf32> to vector<32x8xf32>
    %19 = vector.extract_strided_slice %9 {offsets = [0, 24], sizes = [32, 8], strides = [1, 1]} : vector<32x32xf32> to vector<32x8xf32>
    %20 = vector.shape_cast %16 : vector<32x8xf32> to vector<1x32x8xf32>
    %21 = vector.shape_cast %17 : vector<32x8xf32> to vector<1x32x8xf32>
    %22 = vector.shape_cast %18 : vector<32x8xf32> to vector<1x32x8xf32>
    %23 = vector.shape_cast %19 : vector<32x8xf32> to vector<1x32x8xf32>
    %24 = tpu.concatenate %20, %21, %22, %23 in 0 : vector<1x32x8xf32>, vector<1x32x8xf32>, vector<1x32x8xf32>, vector<1x32x8xf32> -> vector<4x32x8xf32>
    %25 = vector.extract_strided_slice %14 {offsets = [0, 0], sizes = [32, 8], strides = [1, 1]} : vector<32x32xf32> to vector<32x8xf32>
    %26 = vector.extract_strided_slice %14 {offsets = [0, 8], sizes = [32, 8], strides = [1, 1]} : vector<32x32xf32> to vector<32x8xf32>
    %27 = vector.extract_strided_slice %14 {offsets = [0, 16], sizes = [32, 8], strides = [1, 1]} : vector<32x32xf32> to vector<32x8xf32>
    %28 = vector.extract_strided_slice %14 {offsets = [0, 24], sizes = [32, 8], strides = [1, 1]} : vector<32x32xf32> to vector<32x8xf32>
    %29 = vector.shape_cast %25 : vector<32x8xf32> to vector<1x32x8xf32>
    %30 = vector.shape_cast %26 : vector<32x8xf32> to vector<1x32x8xf32>
    %31 = vector.shape_cast %27 : vector<32x8xf32> to vector<1x32x8xf32>
    %32 = vector.shape_cast %28 : vector<32x8xf32> to vector<1x32x8xf32>
    %33 = tpu.concatenate %29, %30, %31, %32 in 0 : vector<1x32x8xf32>, vector<1x32x8xf32>, vector<1x32x8xf32>, vector<1x32x8xf32> -> vector<4x32x8xf32>
    %34 = vector.extract_strided_slice %15 {offsets = [0, 0], sizes = [32, 8], strides = [1, 1]} : vector<32x32xf32> to vector<32x8xf32>
    %35 = vector.extract_strided_slice %15 {offsets = [0, 8], sizes = [32, 8], strides = [1, 1]} : vector<32x32xf32> to vector<32x8xf32>
    %36 = vector.extract_strided_slice %15 {offsets = [0, 16], sizes = [32, 8], strides = [1, 1]} : vector<32x32xf32> to vector<32x8xf32>
    %37 = vector.extract_strided_slice %15 {offsets = [0, 24], sizes = [32, 8], strides = [1, 1]} : vector<32x32xf32> to vector<32x8xf32>
    %38 = vector.shape_cast %34 : vector<32x8xf32> to vector<1x32x8xf32>
    %39 = vector.shape_cast %35 : vector<32x8xf32> to vector<1x32x8xf32>
    %40 = vector.shape_cast %36 : vector<32x8xf32> to vector<1x32x8xf32>
    %41 = vector.shape_cast %37 : vector<32x8xf32> to vector<1x32x8xf32>
    %42 = tpu.concatenate %38, %39, %40, %41 in 0 : vector<1x32x8xf32>, vector<1x32x8xf32>, vector<1x32x8xf32>, vector<1x32x8xf32> -> vector<4x32x8xf32>
    "tpu.trace_start"() <{level = 10 : i32, message = "hqd,hkd->hqk"}> : () -> ()
    %cst_7 = arith.constant dense<0.000000e+00> : vector<4x32x32xf32>
    %43 = tpu.matmul %24, %33, %cst_7 {dimension_numbers = #tpu.dot_dimension_numbers<[2], [2], [1], [1], [0, 0, 0, 1, 1, 1], [0], [0]>} : vector<4x32x8xf32>, vector<4x32x8xf32>, vector<4x32x32xf32> -> vector<4x32x32xf32>
    "tpu.trace_stop"() : () -> ()
    %c0_8 = arith.constant 0 : index
    %c0_9 = arith.constant 0 : index
    %44 = vector.load %arg5[%c0_8, %c0_9] : memref<32x32xf32, #tpu.memory_space<vmem>>, vector<32x32xf32>
    %45 = vector.shape_cast %44 : vector<32x32xf32> to vector<1x32x32xf32>
    %46 = vector.broadcast %45 : vector<1x32x32xf32> to vector<4x32x32xf32>
    %47 = arith.addf %43, %46 : vector<4x32x32xf32>
    %cst_10 = arith.constant dense<0xFF800000> : vector<4x32xf32>
    %48 = vector.multi_reduction <maximumf>, %47, %cst_10 [2] : vector<4x32x32xf32> to vector<4x32xf32>
    %49 = vector.shape_cast %48 : vector<4x32xf32> to vector<4x32x1xf32>
    %50 = vector.broadcast %49 : vector<4x32x1xf32> to vector<4x32x32xf32>
    %51 = arith.subf %47, %50 : vector<4x32x32xf32>
    %52 = math.exp %51 : vector<4x32x32xf32>
    %cst_11 = arith.constant dense<0.000000e+00> : vector<4x32xf32>
    %53 = vector.multi_reduction <add>, %52, %cst_11 [2] : vector<4x32x32xf32> to vector<4x32xf32>
    %54 = vector.shape_cast %53 : vector<4x32xf32> to vector<4x32x1xf32>
    %55 = tpu.reciprocal %54 {approx = true} : vector<4x32x1xf32> -> vector<4x32x1xf32>
    %56 = arith.mulf %54, %55 : vector<4x32x1xf32>
    %cst_12 = arith.constant 2.000000e+00 : f32
    %57 = vector.broadcast %cst_12 : f32 to vector<4x32x1xf32>
    %58 = arith.subf %57, %56 : vector<4x32x1xf32>
    %59 = arith.mulf %55, %58 : vector<4x32x1xf32>
    %60 = vector.broadcast %59 : vector<4x32x1xf32> to vector<4x32x32xf32>
    %61 = arith.mulf %52, %60 : vector<4x32x32xf32>
    "tpu.trace_start"() <{level = 10 : i32, message = "hqk,hkd->hqd"}> : () -> ()
    %cst_13 = arith.constant dense<0.000000e+00> : vector<4x32x8xf32>
    %62 = tpu.matmul %61, %42, %cst_13 {dimension_numbers = #tpu.dot_dimension_numbers<[2], [1], [1], [2], [0, 0, 0, 1, 1, 2], [0], [0]>} : vector<4x32x32xf32>, vector<4x32x8xf32>, vector<4x32x8xf32> -> vector<4x32x8xf32>
    "tpu.trace_stop"() : () -> ()
    %c0_14 = arith.constant 0 : index
    %c0_15 = arith.constant 0 : index
    %c0_16 = arith.constant 0 : index
    %63 = vector.load %arg4[%c0_14, %c0_15, %c0_16] : memref<4x8x32xf32, #tpu.memory_space<vmem>>, vector<4x8x32xf32>
    "tpu.trace_start"() <{level = 10 : i32, message = "hqd,hdm->hqm"}> : () -> ()
    %cst_17 = arith.constant dense<0.000000e+00> : vector<4x32x32xf32>
    %64 = tpu.matmul %62, %63, %cst_17 {dimension_numbers = #tpu.dot_dimension_numbers<[2], [1], [1], [2], [0, 0, 0, 1, 1, 2], [0], [0]>} : vector<4x32x8xf32>, vector<4x8x32xf32>, vector<4x32x32xf32> -> vector<4x32x32xf32>
    "tpu.trace_stop"() : () -> ()
    %cst_18 = arith.constant dense<0.000000e+00> : vector<32x32xf32>
    %65 = vector.multi_reduction <add>, %64, %cst_18 [0] : vector<4x32x32xf32> to vector<32x32xf32>
    %c0_19 = arith.constant 0 : index
    %c0_20 = arith.constant 0 : index
    %66 = vector.load %arg6[%c0_19, %c0_20] : memref<32x32xf32, #tpu.memory_space<vmem>>, vector<32x32xf32>
    tpu.vector_store %arg6[%c0_19, %c0_20], %65 {strides = array<i32>} : memref<32x32xf32, #tpu.memory_space<vmem>>, vector<32x32xf32>,
    return
  }
}

</mosaic_0001>

<bundles_post_ra>
// kernel: tpu_custom_call.1
= control target key start
LH: loop header
LB: loop body
LE: loop exit
PB: predicated region body
PF: predicated region fallthrough
CT: control target
= control target key end

     0   :  { %11 = vsyncpa [#allocation3], 0  ;;  %s2087_s0 = inlined_call_operand.hbm [shape: f32[32,32], index: 0, kind: input, shape index: {}]   ;;  %s2088_s1 = inlined_call_operand.hbm [shape: f32[32,160], index: 1, kind: input, shape index: {}]   ;;  %s2089_s2 = inlined_call_operand.hbm [shape: f32[32,32], index: 2, kind: input, shape index: {}]   ;;  %s2090_s3 = inlined_call_operand.hbm [shape: f32[32,32], index: 3, kind: input, shape index: {}]   ;;  %s2091_s4 = inlined_call_operand.hbm [shape: f32[4,8,32], index: 4, kind: input, shape index: {}]   ;;  %s2092_s5 = inlined_call_operand.hbm [shape: f32[32,32], index: 5, kind: input, shape index: {}]   ;;  %s2093_s6 = inlined_call_operand.hbm [shape: f32[32,32], index: 6, kind: output, shape index: {}]  }
   0x1   :  { %12 = vsyncpa [#allocation6], 0 }
   0x2   :  { %13 = vsyncpa [#allocation9], 0 }
   0x3   :  { %14 = vsyncpa [#allocation12], 0  ;;  %s33_s23 = sshll.u32 %s2088_s1, 4  ;;  %s34_s23 = int_to_ptr.hbm [resolvable:$true] %s33_s23 }
   0x4   :  { %15 = vsyncpa [#allocation4], 0  ;;  %s1601_s24 = smov [#allocation5]   ;;  %s1602_s26 = smov 256  }
   0x5   :  { %s35_s25 = sshll.u32 %s1601_s24, 4  ;;  %s1603_s27 = smov 16   ;;  %s36_s25 = int_to_ptr.vmem [resolvable:$true] %s35_s25 }
   0x6   :  { %41 = dma.hbm_to_vmem [thread:$0]  %s34_s23, 1024, %s36_s25, [#allocation6], %s1602_s26, %s1602_s26, %s1603_s27  }
   0x7   :  { %s59_s30 = sshll.u32 %s2090_s3, 4  ;;  %s1604_s7 = smov [#allocation8]   ;;  %s60_s30 = int_to_ptr.hbm [resolvable:$true] %s59_s30 }
   0x8   :  { %s61_s8 = sshll.u32 %s1604_s7, 4  ;;  %s20_s11 = sshll.u32 %s2087_s0, 4  ;;  %s62_s8 = int_to_ptr.vmem [resolvable:$true] %s61_s8  ;;  %s21_s11 = int_to_ptr.hbm [resolvable:$true] %s20_s11 }
   0x9   :  { %s1605_s1 = smov 128   ;;  %s1606_s12 = smov 8  }
   0xa   :  { %67 = dma.hbm_to_vmem [thread:$0]  %s60_s30, 512, %s62_s8, [#allocation9], %s1605_s1, %s1605_s1, %s1606_s12  }
   0xb   :  { %s46_s15 = sshll.u32 %s2089_s2, 4  ;;  %s1607_s3 = smov [#allocation2]   ;;  %s47_s15 = int_to_ptr.hbm [resolvable:$true] %s46_s15 }
   0xc   :  { %s22_s16 = sshll.u32 %s1607_s3, 4  ;;  %s1608_s0 = smov [#allocation7]   ;;  %s23_s16 = int_to_ptr.vmem [resolvable:$true] %s22_s16 }
   0xd   :  { %28 = dma.hbm_to_vmem [thread:$0]  %s21_s11, 512, %s23_s16, [#allocation3], %s1605_s1, %s1605_s1, %s1606_s12  }
   0xe   :  { %s48_s17 = sshll.u32 %s1608_s0, 4  ;;  %s72_s20 = sshll.u32 %s2091_s4, 4  ;;  %s49_s17 = int_to_ptr.vmem [resolvable:$true] %s48_s17  ;;  %s73_s20 = int_to_ptr.hbm [resolvable:$true] %s72_s20 }
   0xf   :  { %54 = dma.hbm_to_vmem [thread:$0]  %s47_s15, 512, %s49_s17, [#allocation6], %s1605_s1, %s1605_s1, %s1606_s12  }
  0x10   :  { %s85_s22 = sshll.u32 %s2092_s5, 4  ;;  %s1609_s23 = smov [#allocation10]   ;;  %s86_s22 = int_to_ptr.hbm [resolvable:$true] %s85_s22 }
  0x11   :  { %s74_s24 = sshll.u32 %s1609_s23, 4  ;;  %s1610_s25 = smov [#allocation11]   ;;  %s75_s24 = int_to_ptr.vmem [resolvable:$true] %s74_s24 }
  0x12   :  { %80 = dma.hbm_to_vmem [thread:$0]  %s73_s20, 512, %s75_s24, [#allocation9], %s1605_s1, %s1605_s1, %s1606_s12  }
  0x13   :  { %s87_s4 = sshll.u32 %s1610_s25, 4  ;;  %s88_s4 = int_to_ptr.vmem [resolvable:$true] %s87_s4 }
  0x14   :  { %93 = dma.hbm_to_vmem [thread:$0]  %s86_s22, 512, %s88_s4, [#allocation12], %s1605_s1, %s1605_s1, %s1606_s12  }
  0x15   :  { %1591 = dma.done.wait [#allocation3], 512  }
  0x16   :  { %1592 = vsyncadd [#allocation3], 4294966784 }
  0x17   :  { %1593 = dma.done.wait [#allocation6], 1536  }
  0x18   :  { %1594 = vsyncadd [#allocation6], 4294965760 }
  0x19   :  { %1595 = dma.done.wait [#allocation9], 1024  }
  0x1a   :  { %1596 = vsyncadd [#allocation9], 4294966272 }
  0x1b   :  { %1597 = dma.done.wait [#allocation12], 512  }
  0x1c   :  { %1598 = vsyncadd [#allocation12], 4294966784  ;;  %v128_v0 = vld [vmem:[#allocation5 + $0x30] sm:$0xff]  ;;  %v126_v1 = vld [vmem:[#allocation5 + $0x20] sm:$0xff]  ;;  %s1611_s5 = smov 96   ;;  %vm130_vm0 = vcmask 261120  }
  0x1d   :  { %155 = vmatpush.msra.mxu0 %v128_v0  ;;  %1304 = vmatpush.msra.mxu2 %v128_v0  ;;  %v124_v2 = vld [vmem:[#allocation5 + $0x10] sm:$0xff]  ;;  %v208_v3 = vld [vmem:[#allocation8 + $0x18] sm:$0xff]  ;;  %v206_v4 = vld [vmem:[#allocation8 + $0x8] sm:$0xff]  ;;  %s1612_s26 = smov 64   ;;  %s1613_s27 = smov 32   ;;  %vm417_vm1 = vcmask 64512  }
  0x1e   :  { %v122_v5 = vld [vmem:[#allocation5] sm:$0xff]  ;;  %279 = vrot.lane.b32.xlu0 %v208_v3, %s1611_s5  ;;  %275 = vrot.lane.b32.xlu1 %v206_v4, %s1611_s5  ;;  %v1688_v6 = vld [vmem:[#allocation7 + $0x18] sm:$0xff]  ;;  %v1692_v8 = vld [vmem:[#allocation2 + $0x10] sm:$0xff]  ;;  %s1614_s28 = smov 112   ;;  %s1615_s29 = smov 120  }
  0x1f   :  { %156 = vmatpush.msra.mxu0 %v126_v1  ;;  %1305 = vmatpush.msra.mxu2 %v126_v1  ;;  %v1690_v7 = vld [vmem:[#allocation2] sm:$0xff]  ;;  %v207_v9 = vld [vmem:[#allocation8 + $0x10] sm:$0xff]  ;;  %v1700_v11 = vld [vmem:[#allocation7 + $0x8] sm:$0xff]  ;;  %s1616_s30 = smov 104   ;;  %s1617_s7 = smov [#allocation13]  }
  0x20   :  { %263 = vrot.lane.b32.xlu2 %v1688_v6, %s1612_s26  ;;  %v205_v10 = vld [vmem:[#allocation8] sm:$0xff]  ;;  %v1704_v12 = vld [vmem:[#allocation2 + $0x8] sm:$0xff]  ;;  %v1706_v13 = vld [vmem:[#allocation2 + $0x18] sm:$0xff]  ;;  %s1214_s8 = sshll.u32 %s1617_s7, 4  ;;  %s1216_s11 = sshll.u32 %s2093_s6, 4  ;;  %s1215_s8 = int_to_ptr.vmem [resolvable:$true] %s1214_s8  ;;  %s1217_s11 = int_to_ptr.hbm [resolvable:$true] %s1216_s11 }
  0x21   :  { %157 = vmatpush.msra.mxu0 %v124_v2  ;;  %1306 = vmatpush.msra.mxu2 %v124_v2  ;;  %v1714_v14 = vld [vmem:[#allocation7 + $0x10] sm:$0xff]  ;;  %v1730_v24 = vld [vmem:[#allocation7] sm:$0xff]  ;;  %v129_v53 = vld [vmem:[#allocation5 + $0x38] sm:$0xff] }
  0x22   :  { %v127_v54 = vld [vmem:[#allocation5 + $0x28] sm:$0xff]  ;;  %1308 = vmatpush.msra.mxu3 %v129_v53  ;;  %184 = vmatpush.msra.mxu1 %v129_v53  ;;  %v125_v55 = vld [vmem:[#allocation5 + $0x18] sm:$0xff] }
  0x23   :  { %158 = vmatpush.msra.mxu0 %v122_v5  ;;  %1307 = vmatpush.msra.mxu2 %v122_v5  ;;  %v123_v56 = vld [vmem:[#allocation5 + $0x8] sm:$0xff] }
  0x24   :  { %1232 = vmatmul.msk.f32.vlgmr.msra.gmra.mxu0 %vm130_vm0, %v1690_v7  ;;  %1234 = vmatmul.msk.f32.vlgmr.msra.gmra.mxu2 %vm130_vm0, %v1692_v8 }
  0x25   :  { %1309 = vmatpush.msra.mxu3 %v127_v54  ;;  %185 = vmatpush.msra.mxu1 %v127_v54  ;;  %v406_v54 = vld [vmem:[#allocation11 + $0x8] sm:$0xff] }
  0x26   :  { %277 = vrot.lane.b32.xlu0 %v207_v9, %s1611_s5  ;;  %273 = vrot.lane.b32.xlu1 %v205_v10, %s1611_s5 }
  0x27   :  { %1310 = vmatpush.msra.mxu3 %v125_v55  ;;  %186 = vmatpush.msra.mxu1 %v125_v55 }
  0x28   :  { %259 = vrot.lane.b32.xlu2 %v1700_v11, %s1612_s26 }
  0x29   :  { %1311 = vmatpush.msra.mxu3 %v123_v56  ;;  %187 = vmatpush.msra.mxu1 %v123_v56 }
  0x2a   :  { %1238 = vmatmul.msk.f32.vlgmr.msra.gmra.mxu3 %vm130_vm0, %v1692_v8  ;;  %1236 = vmatmul.msk.f32.vlgmr.msra.gmra.mxu1 %vm130_vm0, %v1690_v7 }
  0x2c   :  { %1233 = vmatmul.msk.f32.gmra.mxu0 %vm130_vm0, %v1704_v12  ;;  %1235 = vmatmul.msk.f32.gmra.mxu2 %vm130_vm0, %v1706_v13 }
  0x2e   :  { %261 = vrot.lane.b32.xlu0 %v1714_v14, %s1612_s26 }
  0x32   :  { %1239 = vmatmul.msk.f32.gmra.mxu3 %vm130_vm0, %v1706_v13  ;;  %1237 = vmatmul.msk.f32.gmra.mxu1 %vm130_vm0, %v1704_v12 }
  0x7a   :  { %v264_v28 = vpop.permute.xlu2 %263 }
  0x82   :  { %v260_v29 = vpop.permute.xlu2 %259 }
  0x90   :  { %v280_v15 = vpop.permute.xlu0 %279  ;;  %v276_v17 = vpop.permute.xlu1 %275 }
  0x98   :  { %v278_v18 = vpop.permute.xlu0 %277  ;;  %v274_v26 = vpop.permute.xlu1 %273 }
  0xa0   :  { %v262_v30 = vpop.permute.xlu0 %261 }
  0xa1   :  { %v1718_v16 = vpop.f32.mrf.mxu0 }
  0xa2   :  { %v285_v27 = vmul.f32 %v274_v26, %v1718_v16  ;;  %v209_v62 = vmul.f32 %v1730_v24, %v1718_v16 }
  0xa7   :  { %v1720_v19 = vpop.f32.mrf.mxu2  ;;  %v189_v26 = vpop.f32.mrf.mxu1 }
  0xa8   :  { %v287_v20 = vmul.f32 %v278_v18, %v1720_v19  ;;  %v271_v32 = vmul.f32 %v262_v30, %v1720_v19 }
  0xa9   :  { %v1723_v21 = vpop.f32.mrf.mxu0 }
  0xaa   :  { %297 = vrot.lane.b32.xlu1 %v287_v20, %s1611_s5  ;;  %v286_v22 = vmul.f32 %v276_v17, %v1723_v21  ;;  %v270_v37 = vmul.f32 %v260_v29, %v1723_v21 }
  0xac   :  { %295 = vrot.lane.b32.xlu0 %v286_v22, %s1611_s5 }
  0xaf   :  { %v1728_v23 = vpop.f32.mrf.mxu2  ;;  %v192_v30 = vpop.f32.mrf.mxu1 }
  0xb0   :  { %v288_v25 = vmul.f32 %v280_v15, %v1728_v23  ;;  %v272_v48 = vmul.f32 %v264_v28, %v1728_v23  ;;  %v212_v17 = vmul.f32 %v1688_v6, %v1728_v23 }
  0xb2   :  { %257 = vrot.lane.b32.xlu1 %v1730_v24, %s1612_s26  ;;  %299 = vrot.lane.b32.xlu2 %v288_v25, %s1611_s5  ;;  %v195_v24 = vpop.f32.mrf.mxu3 }
  0xb4   :  { %217 = vrot.lane.b32.xlu0 %v205_v10, %s1613_s27 }
  0xba   :  { %219 = vrot.lane.b32.xlu1 %v206_v4, %s1613_s27  ;;  %293 = vrot.lane.b32.xlu2 %v285_v27, %s1611_s5  ;;  %v198_v27 = vpop.f32.mrf.mxu3 }
  0xbb   :  { %v1816_v28 = vpack.i.bf16 %v195_v24, %v198_v27 }
  0xbc   :  { %223 = vrot.lane.b32.xlu0 %v208_v3, %s1613_s27  ;;  %v210_v3 = vmul.f32 %v1700_v11, %v1723_v21 }
  0xc2   :  { %221 = vrot.lane.b32.xlu2 %v207_v9, %s1613_s27 }
 0x10c   :  { %v300_v31 = vpop.permute.xlu2 %299 }
 0x10d   :  { %v308_v49 = vadd.f32 %v300_v31, %v272_v48  ;;  %v1820_v31 = vpack.i.bf16 %v189_v26, %v192_v30  ;;  %v405_v48 = vld [vmem:[#allocation11] sm:$0xff] }
 0x114   :  { %v294_v36 = vpop.permute.xlu2 %293 }
 0x11c   :  { %v298_v33 = vpop.permute.xlu1 %297  ;;  %v222_v42 = vpop.permute.xlu2 %221 }
 0x11d   :  { %v307_v34 = vadd.f32 %v298_v33, %v271_v32  ;;  %v231_v44 = vmul.f32 %v222_v42, %v1720_v19 }
 0x11e   :  { %v296_v35 = vpop.permute.xlu0 %295 }
 0x11f   :  { %353 = vrot.lane.b32.xlu0 %v307_v34, %s1614_s28  ;;  %v306_v39 = vadd.f32 %v296_v35, %v270_v37 }
 0x124   :  { %v258_v38 = vpop.permute.xlu1 %257 }
 0x125   :  { %v269_v46 = vmul.f32 %v258_v38, %v1718_v16 }
 0x126   :  { %v218_v40 = vpop.permute.xlu0 %217 }
 0x127   :  { %v229_v41 = vmul.f32 %v218_v40, %v1718_v16  ;;  %343 = vrot.lane.b32.xlu0 %v306_v39, %s1615_s29  ;;  %v305_v47 = vadd.f32 %v294_v36, %v269_v46  ;;  %v211_v16 = vmul.f32 %v1714_v14, %v1720_v19 }
 0x129   :  { %237 = vrot.lane.b32.xlu2 %v229_v41, %s1611_s5 }
 0x12c   :  { %v220_v43 = vpop.permute.xlu1 %219 }
 0x12d   :  { %v230_v45 = vmul.f32 %v220_v43, %v1723_v21 }
 0x12e   :  { %v224_v50 = vpop.permute.xlu0 %223 }
 0x12f   :  { %241 = vrot.lane.b32.xlu0 %v231_v44, %s1611_s5  ;;  %239 = vrot.lane.b32.xlu1 %v230_v45, %s1611_s5  ;;  %v232_v51 = vmul.f32 %v224_v50, %v1728_v23 }
 0x131   :  { %345 = vrot.lane.b32.xlu2 %v307_v34, %s1615_s29 }
 0x137   :  { %357 = vrot.lane.b32.xlu0 %v305_v47, %s1616_s30  ;;  %341 = vrot.lane.b32.xlu1 %v305_v47, %s1615_s29 }
 0x139   :  { %351 = vrot.lane.b32.xlu2 %v306_v39, %s1614_s28 }
 0x13f   :  { %355 = vrot.lane.b32.xlu0 %v308_v49, %s1614_s28  ;;  %347 = vrot.lane.b32.xlu1 %v308_v49, %s1615_s29 }
 0x141   :  { %349 = vrot.lane.b32.xlu2 %v305_v47, %s1614_s28 }
 0x147   :  { %411 = vrot.lane.b32.xlu0 %v306_v39, %s1612_s26  ;;  %361 = vrot.lane.b32.xlu1 %v307_v34, %s1616_s30 }
 0x149   :  { %409 = vrot.lane.b32.xlu2 %v305_v47, %s1612_s26 }
 0x14f   :  { %359 = vrot.lane.b32.xlu1 %v306_v39, %s1616_s30 }
 0x151   :  { %363 = vrot.lane.b32.xlu2 %v308_v49, %s1616_s30 }
 0x157   :  { %243 = vrot.lane.b32.xlu1 %v232_v51, %s1611_s5 }
 0x159   :  { %415 = vrot.lane.b32.xlu2 %v308_v49, %s1612_s26 }
 0x15f   :  { %413 = vrot.lane.b32.xlu1 %v307_v34, %s1612_s26 }
 0x183   :  { %v238_v52 = vpop.permute.xlu2 %237 }
 0x184   :  { %v249_v63 = vadd.f32 %v238_v52, %v209_v62  ;;  %v1863_v62 = vld [vmem:[#allocation11 + $0x18] sm:$0xff] }
 0x18b   :  { %v346_v57 = vpop.permute.xlu2 %345 }
 0x18c   :  { %467 = vrot.lane.b32.xlu2 %v346_v57, %s1612_s26 }
 0x191   :  { %v354_v58 = vpop.permute.xlu0 %353 }
 0x193   :  { %v352_v59 = vpop.permute.xlu2 %351 }
 0x194   :  { %520 = vrot.lane.b32.xlu2 %v354_v58, %s1612_s26  ;;  %v1856_v58 = vld [vmem:[#allocation11 + $0x10] sm:$0xff] }
 0x199   :  { %v344_v60 = vpop.permute.xlu0 %343 }
 0x19a   :  { %465 = vrot.lane.b32.xlu1 %v344_v60, %s1612_s26 }
 0x19b   :  { %v350_v61 = vpop.permute.xlu2 %349 }
 0x1a1   :  { %v242_v0 = vpop.permute.xlu0 %241  ;;  %v240_v1 = vpop.permute.xlu1 %239 }
 0x1a2   :  { %313 = vrot.lane.b32.xlu1 %v249_v63, %s1615_s29  ;;  %v250_v4 = vadd.f32 %v240_v1, %v210_v3  ;;  %v251_v18 = vadd.f32 %v242_v0, %v211_v16 }
 0x1a3   :  { %v410_v2 = vpop.permute.xlu2 %409 }
 0x1a9   :  { %v358_v5 = vpop.permute.xlu0 %357  ;;  %v342_v7 = vpop.permute.xlu1 %341 }
 0x1aa   :  { %315 = vrot.lane.b32.xlu1 %v250_v4, %s1615_s29 }
 0x1ab   :  { %v364_v8 = vpop.permute.xlu2 %363 }
 0x1b1   :  { %v356_v9 = vpop.permute.xlu0 %355  ;;  %v348_v10 = vpop.permute.xlu1 %347 }
 0x1b2   :  { %522 = vrot.lane.b32.xlu2 %v356_v9, %s1612_s26  ;;  %469 = vrot.lane.b32.xlu0 %v348_v10, %s1612_s26 }
 0x1b3   :  { %518 = vrot.lane.b32.xlu1 %v352_v59, %s1612_s26  ;;  %v416_v12 = vpop.permute.xlu2 %415 }
 0x1b4   :  { %1240 = vmatpush.xpose.msk.msrb.mxu2 %vm417_vm1, %v416_v12 }
 0x1b9   :  { %v362_v13 = vpop.permute.xlu1 %361  ;;  %v412_v22 = vpop.permute.xlu0 %411 }
 0x1ba   :  { %463 = vrot.lane.b32.xlu0 %v342_v7, %s1612_s26 }
 0x1bb   :  { %516 = vrot.lane.b32.xlu1 %v350_v61, %s1612_s26 }
 0x1c1   :  { %v360_v11 = vpop.permute.xlu1 %359 }
 0x1c2   :  { %573 = vrot.lane.b32.xlu0 %v362_v13, %s1612_s26  ;;  %571 = vrot.lane.b32.xlu2 %v360_v11, %s1612_s26 }
 0x1c3   :  { %329 = vrot.lane.b32.xlu1 %v249_v63, %s1616_s30 }
 0x1c9   :  { %v244_v15 = vpop.permute.xlu1 %243 }
 0x1ca   :  { %575 = vrot.lane.b32.xlu0 %v364_v8, %s1612_s26  ;;  %569 = vrot.lane.b32.xlu2 %v358_v5, %s1612_s26  ;;  %v252_v20 = vadd.f32 %v244_v15, %v212_v17 }
 0x1cb   :  { %331 = vrot.lane.b32.xlu1 %v250_v4, %s1616_s30 }
 0x1d1   :  { %v414_v21 = vpop.permute.xlu1 %413 }
 0x1d2   :  { %317 = vrot.lane.b32.xlu0 %v251_v18, %s1615_s29  ;;  %319 = vrot.lane.b32.xlu2 %v252_v20, %s1615_s29 }
 0x1d3   :  { %1241 = vmatpush.xpose.msk.msrb.mxu2 %vm417_vm1, %v414_v21  ;;  %327 = vrot.lane.b32.xlu1 %v252_v20, %s1614_s28 }
 0x1d7   :  { %1242 = vmatpush.xpose.msk.msrb.mxu2 %vm417_vm1, %v412_v22 }
 0x1da   :  { %321 = vrot.lane.b32.xlu0 %v249_v63, %s1614_s28  ;;  %325 = vrot.lane.b32.xlu2 %v251_v18, %s1614_s28 }
 0x1db   :  { %1243 = vmatpush.xpose.msk.msrb.mxu2 %vm417_vm1, %v410_v2  ;;  %1330 = vrot.lane.b32.xlu1 %v1816_v28, %s1615_s29 }
 0x1de   :  { %1244 = vmatmul.msk.f32.vlgmr.msrb.gmra.mxu2 %vm417_vm1, %v249_v63 }
 0x1df   :  { %870 = vmatpush.msra.mxu2 %v198_v27 }
 0x1e1   :  { %871 = vmatpush.msra.mxu2 %v195_v24 }
 0x1e2   :  { %335 = vrot.lane.b32.xlu2 %v252_v20, %s1616_s30  ;;  %323 = vrot.lane.b32.xlu0 %v250_v4, %s1614_s28 }
 0x1e3   :  { %872 = vmatpush.msra.mxu2 %v192_v30 }
 0x1e5   :  { %873 = vmatpush.msra.mxu2 %v189_v26 }
 0x1e6   :  { %1245 = vmatmul.msk.f32.gmra.mxu2 %vm417_vm1, %v250_v4  ;;  %v468_v6 = vpop.permute.xlu2 %467 }
 0x1ea   :  { %333 = vrot.lane.b32.xlu0 %v251_v18, %s1616_s30  ;;  %1335 = vrot.lane.b32.xlu2 %v1820_v31, %s1615_s29 }
 0x1ee   :  { %1246 = vmatmul.msk.f32.gmra.mxu2 %vm417_vm1, %v251_v18  ;;  %v521_v14 = vpop.permute.xlu2 %520 }
 0x1f2   :  { %1340 = vrot.lane.b32.xlu0 %v1816_v28, %s1614_s28 }
 0x1f6   :  { %1247 = vmatmul.msk.f32.gmra.mxu2 %vm417_vm1, %v252_v20 }
 0x20c   :  { %v523_v19 = vpop.permute.xlu2 %522  ;;  %v466_v23 = vpop.permute.xlu1 %465 }
 0x20d   :  { %1256 = vmatpush.xpose.msk.msrb.mxu0 %vm417_vm1, %v523_v19 }
 0x211   :  { %1257 = vmatpush.xpose.msk.msrb.mxu0 %vm417_vm1, %v521_v14 }
 0x214   :  { %v314_v25 = vpop.permute.xlu1 %313 }
 0x21c   :  { %v316_v29 = vpop.permute.xlu1 %315  ;;  %v572_v37 = vpop.permute.xlu2 %571 }
 0x224   :  { %v470_v32 = vpop.permute.xlu0 %469  ;;  %v570_v39 = vpop.permute.xlu2 %569 }
 0x225   :  { %v519_v33 = vpop.permute.xlu1 %518  ;;  %1248 = vmatpush.xpose.msk.msrb.mxu3 %vm417_vm1, %v470_v32 }
 0x226   :  { %1258 = vmatpush.xpose.msk.msrb.mxu0 %vm417_vm1, %v519_v33 }
 0x229   :  { %1249 = vmatpush.xpose.msk.msrb.mxu3 %vm417_vm1, %v468_v6 }
 0x22c   :  { %v464_v34 = vpop.permute.xlu0 %463  ;;  %v320_v42 = vpop.permute.xlu2 %319 }
 0x22d   :  { %v517_v35 = vpop.permute.xlu1 %516  ;;  %1250 = vmatpush.xpose.msk.msrb.mxu3 %vm417_vm1, %v466_v23 }
 0x22e   :  { %1259 = vmatpush.xpose.msk.msrb.mxu0 %vm417_vm1, %v517_v35 }
 0x231   :  { %1251 = vmatpush.xpose.msk.msrb.mxu3 %vm417_vm1, %v464_v34 }
 0x234   :  { %v574_v36 = vpop.permute.xlu0 %573  ;;  %1252 = vmatmul.msk.f32.vlgmr.msrb.gmra.mxu3 %vm417_vm1, %v314_v25  ;;  %v326_v46 = vpop.permute.xlu2 %325 }
 0x235   :  { %v330_v41 = vpop.permute.xlu1 %329 }
 0x23c   :  { %v576_v38 = vpop.permute.xlu0 %575  ;;  %1253 = vmatmul.msk.f32.gmra.mxu3 %vm417_vm1, %v316_v29  ;;  %v336_v53 = vpop.permute.xlu2 %335 }
 0x23d   :  { %1264 = vmatpush.xpose.msk.msrb.mxu1 %vm417_vm1, %v576_v38  ;;  %v332_v44 = vpop.permute.xlu1 %331 }
 0x241   :  { %1265 = vmatpush.xpose.msk.msrb.mxu1 %vm417_vm1, %v574_v36 }
 0x244   :  { %v318_v40 = vpop.permute.xlu0 %317  ;;  %v1336_v12 = vpop.permute.xlu2 %1335 }
 0x245   :  { %1254 = vmatmul.msk.f32.gmra.mxu3 %vm417_vm1, %v318_v40  ;;  %1266 = vmatpush.xpose.msk.msrb.mxu1 %vm417_vm1, %v572_v37  ;;  %v328_v51 = vpop.permute.xlu1 %327  ;;  %v1337_v13 = vunpack.i.l.bf16 %v1336_v12  ;;  %v1338_v15 = vunpack.i.h.bf16 %v1336_v12 }
 0x249   :  { %1267 = vmatpush.xpose.msk.msrb.mxu1 %vm417_vm1, %v570_v39 }
 0x24c   :  { %v322_v43 = vpop.permute.xlu0 %321  ;;  %1268 = vmatmul.msk.f32.vlgmr.msrb.gmra.mxu1 %vm417_vm1, %v330_v41 }
 0x24d   :  { %1255 = vmatmul.msk.f32.gmra.mxu3 %vm417_vm1, %v320_v42  ;;  %1260 = vmatmul.msk.f32.vlgmr.msrb.gmra.mxu0 %vm417_vm1, %v322_v43  ;;  %v1331_v8 = vpop.permute.xlu1 %1330 }
 0x24e   :  { %v1332_v9 = vunpack.i.l.bf16 %v1331_v8  ;;  %v1333_v11 = vunpack.i.h.bf16 %v1331_v8 }
 0x250   :  { %911 = vmatpush.msra.mxu3 %v1332_v9 }
 0x252   :  { %912 = vmatpush.msra.mxu3 %v1333_v11 }
 0x254   :  { %v324_v45 = vpop.permute.xlu0 %323  ;;  %1269 = vmatmul.msk.f32.gmra.mxu1 %vm417_vm1, %v332_v44  ;;  %913 = vmatpush.msra.mxu3 %v1337_v13 }
 0x255   :  { %1261 = vmatmul.msk.f32.gmra.mxu0 %vm417_vm1, %v324_v45 }
 0x256   :  { %914 = vmatpush.msra.mxu3 %v1338_v15 }
 0x25c   :  { %v334_v47 = vpop.permute.xlu0 %333 }
 0x25d   :  { %1262 = vmatmul.msk.f32.gmra.mxu0 %vm417_vm1, %v326_v46  ;;  %1270 = vmatmul.msk.f32.gmra.mxu1 %vm417_vm1, %v334_v47 }
 0x261   :  { %v451_v49 = vpop.f32.mrf.mxu2 }
 0x262   :  { %v1846_v50 = vadd.f32 %v451_v49, %v405_v48 }
 0x264   :  { %v622_v52 = vsel %vm130_vm0, %v1846_v50, -inf  ;;  %v1341_v2 = vpop.permute.xlu0 %1340 }
 0x265   :  { %623 = vmax.xlane.f32.xlu0 %v622_v52  ;;  %1263 = vmatmul.msk.f32.gmra.mxu0 %vm417_vm1, %v328_v51  ;;  %v1343_v3 = vunpack.i.h.bf16 %v1341_v2  ;;  %v1342_v4 = vunpack.i.l.bf16 %v1341_v2 }
 0x266   :  { %1271 = vmatmul.msk.f32.gmra.mxu1 %vm417_vm1, %v336_v53 }
 0x267   :  { %952 = vmatpush.msra.mxu0 %v1342_v4 }
 0x269   :  { %v454_v55 = vpop.f32.mrf.mxu2  ;;  %953 = vmatpush.msra.mxu0 %v1343_v3 }
 0x26a   :  { %v1852_v56 = vadd.f32 %v454_v55, %v406_v54 }
 0x26c   :  { %v625_v57 = vsel %vm130_vm0, %v1852_v56, -inf }
 0x26d   :  { %626 = vmax.xlane.f32.xlu2 %v625_v57 }
 0x271   :  { %v457_v59 = vpop.f32.mrf.mxu2 }
 0x272   :  { %v1859_v60 = vadd.f32 %v457_v59, %v1856_v58 }
 0x274   :  { %v628_v61 = vsel %vm130_vm0, %v1859_v60, -inf }
 0x275   :  { %629 = vmax.xlane.f32.xlu1 %v628_v61 }
 0x279   :  { %v460_v63 = vpop.f32.mrf.mxu2 }
 0x27a   :  { %v1866_v0 = vadd.f32 %v460_v63, %v1863_v62 }
 0x27c   :  { %v631_v1 = vsel %vm130_vm0, %v1866_v0, -inf }
 0x27d   :  { %632 = vmax.xlane.f32.xlu2 %v631_v1 }
 0x2b7   :  { %v504_v5 = vpop.f32.mrf.mxu3 }
 0x2b8   :  { %v1870_v7 = vadd.f32 %v504_v5, %v405_v48 }
 0x2ba   :  { %v634_v10 = vsel %vm130_vm0, %v1870_v7, -inf }
 0x2bb   :  { %635 = vmax.xlane.f32.xlu1 %v634_v10 }
 0x2bf   :  { %v507_v16 = vpop.f32.mrf.mxu3 }
 0x2c0   :  { %v1874_v17 = vadd.f32 %v507_v16, %v406_v54 }
 0x2c2   :  { %v637_v18 = vsel %vm130_vm0, %v1874_v17, -inf }
 0x2c3   :  { %638 = vmax.xlane.f32.xlu2 %v637_v18 }
 0x2c8   :  { %v510_v37 = vpop.f32.mrf.mxu3 }
 0x2c9   :  { %v610_v20 = vpop.f32.mrf.mxu1  ;;  %v1906_v42 = vadd.f32 %v510_v37, %v1856_v58 }
 0x2ca   :  { %v557_v21 = vpop.f32.mrf.mxu0  ;;  %v1882_v14 = vadd.f32 %v610_v20, %v405_v48 }
 0x2cb   :  { %v1878_v22 = vadd.f32 %v557_v21, %v405_v48 }
 0x2cc   :  { %v658_v25 = vsel %vm130_vm0, %v1882_v14, -inf }
 0x2cd   :  { %v646_v6 = vsel %vm130_vm0, %v1878_v22, -inf }
 0x2ce   :  { %647 = vmax.xlane.f32.xlu0 %v646_v6 }
 0x2d0   :  { %v513_v49 = vpop.f32.mrf.mxu3 }
 0x2d1   :  { %v613_v19 = vpop.f32.mrf.mxu1 }
 0x2d2   :  { %v560_v23 = vpop.f32.mrf.mxu0  ;;  %v1890_v29 = vadd.f32 %v613_v19, %v406_v54 }
 0x2d3   :  { %v1884_v24 = vadd.f32 %v560_v23, %v406_v54  ;;  %v1921_v54 = vadd.f32 %v513_v49, %v1863_v62 }
 0x2d4   :  { %v661_v39 = vsel %vm130_vm0, %v1890_v29, -inf }
 0x2d5   :  { %v649_v26 = vsel %vm130_vm0, %v1884_v24, -inf }
 0x2d6   :  { %659 = vmax.xlane.f32.xlu0 %v658_v25  ;;  %650 = vmax.xlane.f32.xlu1 %v649_v26 }
 0x2d8   :  { %v624_v27 = vpop.xlane.xlu0 %623 }
 0x2d9   :  { %v670_v30 = vsub.f32 %v1846_v50, %v624_v27  ;;  %v640_v50 = vsel %vm130_vm0, %v1906_v42, -inf }
 0x2da   :  { %v563_v32 = vpop.f32.mrf.mxu0  ;;  %v616_v33 = vpop.f32.mrf.mxu1 }
 0x2db   :  { %v686_v34 = vmul.f32 1.442695, %v670_v30  ;;  %v1894_v35 = vadd.f32 %v563_v32, %v1856_v58  ;;  %v1897_v36 = vadd.f32 %v616_v33, %v1856_v58  ;;  %v643_v58 = vsel %vm130_vm0, %v1921_v54, -inf }
 0x2dd   :  { %1359 = vpow2.f32 %v686_v34  ;;  %v664_v38 = vsel %vm130_vm0, %v1897_v36, -inf  ;;  %v652_v40 = vsel %vm130_vm0, %v1894_v35, -inf }
 0x2de   :  { %665 = vmax.xlane.f32.xlu0 %v664_v38  ;;  %662 = vmax.xlane.f32.xlu1 %v661_v39 }
 0x2df   :  { %653 = vmax.xlane.f32.xlu2 %v652_v40 }
 0x2e0   :  { %v627_v41 = vpop.xlane.xlu2 %626 }
 0x2e1   :  { %v671_v46 = vsub.f32 %v1852_v56, %v627_v41 }
 0x2e2   :  { %v566_v43 = vpop.f32.mrf.mxu0 }
 0x2e3   :  { %v1908_v44 = vpop.eup %1359  ;;  %v1911_v45 = vadd.f32 %v566_v43, %v1863_v62  ;;  %v619_v51 = vpop.f32.mrf.mxu1  ;;  %v688_v52 = vmul.f32 1.442695, %v671_v46 }
 0x2e4   :  { %v718_v47 = vsel %vm130_vm0, %v1908_v44, 0.0  ;;  %v1925_v56 = vadd.f32 %v619_v51, %v1863_v62 }
 0x2e5   :  { %v655_v48 = vsel %vm130_vm0, %v1911_v45, -inf  ;;  %1361 = vpow2.f32 %v688_v52 }
 0x2e6   :  { %719 = vadd.xlane.f32.xlu0 %v718_v47  ;;  %656 = vmax.xlane.f32.xlu1 %v655_v48  ;;  %v667_v59 = vsel %vm130_vm0, %v1925_v56, -inf }
 0x2e7   :  { %641 = vmax.xlane.f32.xlu2 %v640_v50 }
 0x2e8   :  { %v630_v53 = vpop.xlane.xlu1 %629 }
 0x2e9   :  { %v672_v55 = vsub.f32 %v1859_v60, %v630_v53 }
 0x2eb   :  { %v690_v57 = vmul.f32 1.442695, %v672_v55  ;;  %v1932_v1 = vpop.eup %1361 }
 0x2ec   :  { %v721_v3 = vsel %vm130_vm0, %v1932_v1, 0.0 }
 0x2ed   :  { %1363 = vpow2.f32 %v690_v57 }
 0x2ee   :  { %644 = vmax.xlane.f32.xlu0 %v643_v58 }
 0x2ef   :  { %668 = vmax.xlane.f32.xlu2 %v667_v59 }
 0x2f0   :  { %v633_v61 = vpop.xlane.xlu2 %632 }
 0x2f1   :  { %v673_v63 = vsub.f32 %v1866_v0, %v633_v61 }
 0x2f3   :  { %v1934_v60 = vpop.eup %1363  ;;  %v692_v62 = vmul.f32 1.442695, %v673_v63 }
 0x2f4   :  { %v724_v2 = vsel %vm130_vm0, %v1934_v60, 0.0 }
 0x2f5   :  { %1365 = vpow2.f32 %v692_v62 }
 0x2f6   :  { %725 = vadd.xlane.f32.xlu0 %v724_v2 }
 0x2f7   :  { %722 = vadd.xlane.f32.xlu2 %v721_v3 }
 0x2fb   :  { %v1940_v4 = vpop.eup %1365 }
 0x2fc   :  { %v727_v5 = vsel %vm130_vm0, %v1940_v4, 0.0 }
 0x2fe   :  { %728 = vadd.xlane.f32.xlu0 %v727_v5 }
 0x30f   :  { %1350 = vrot.lane.b32.xlu2 %v1820_v31, %s1614_s28 }
 0x32e   :  { %v636_v0 = vpop.xlane.xlu1 %635 }
 0x32f   :  { %v674_v6 = vsub.f32 %v1870_v7, %v636_v0 }
 0x336   :  { %v639_v8 = vpop.xlane.xlu2 %638 }
 0x337   :  { %v675_v12 = vsub.f32 %v1874_v17, %v639_v8  ;;  %v694_v17 = vmul.f32 1.442695, %v674_v6 }
 0x339   :  { %v696_v11 = vmul.f32 1.442695, %v675_v12 }
 0x341   :  { %v648_v9 = vpop.xlane.xlu0 %647 }
 0x342   :  { %v678_v10 = vsub.f32 %v1878_v22, %v648_v9 }
 0x344   :  { %v702_v13 = vmul.f32 1.442695, %v678_v10 }
 0x346   :  { %1367 = vpow2.f32 %v702_v13 }
 0x347   :  { %1369 = vpow2.f32 %v696_v11 }
 0x349   :  { %v660_v15 = vpop.xlane.xlu0 %659  ;;  %v651_v16 = vpop.xlane.xlu1 %650 }
 0x34a   :  { %v682_v18 = vsub.f32 %v1882_v14, %v660_v15  ;;  %v679_v20 = vsub.f32 %v1884_v24, %v651_v16 }
 0x34c   :  { %v1950_v21 = vpop.eup %1367  ;;  %v710_v19 = vmul.f32 1.442695, %v682_v18  ;;  %v704_v23 = vmul.f32 1.442695, %v679_v20 }
 0x34d   :  { %v742_v22 = vsel %vm130_vm0, %v1950_v21, 0.0  ;;  %v1955_v27 = vpop.eup %1369 }
 0x34e   :  { %1371 = vpow2.f32 %v710_v19  ;;  %743 = vadd.xlane.f32.xlu0 %v742_v22  ;;  %v733_v37 = vsel %vm130_vm0, %v1955_v27, 0.0 }
 0x34f   :  { %1373 = vpow2.f32 %v704_v23 }
 0x350   :  { %1375 = vpow2.f32 %v694_v17 }
 0x351   :  { %v666_v25 = vpop.xlane.xlu0 %665  ;;  %v663_v26 = vpop.xlane.xlu1 %662 }
 0x352   :  { %v683_v14 = vsub.f32 %v1890_v29, %v663_v26  ;;  %v1958_v24 = vpop.xlane.xlu2 %653  ;;  %v684_v33 = vsub.f32 %v1897_v36, %v666_v25 }
 0x354   :  { %v1960_v30 = vpop.eup %1371  ;;  %v712_v7 = vmul.f32 1.442695, %v683_v14  ;;  %v714_v38 = vmul.f32 1.442695, %v684_v33 }
 0x355   :  { %v1962_v32 = vpop.eup %1373  ;;  %v754_v34 = vsel %vm130_vm0, %v1960_v30, 0.0 }
 0x356   :  { %755 = vadd.xlane.f32.xlu1 %v754_v34  ;;  %v745_v29 = vsel %vm130_vm0, %v1962_v32, 0.0  ;;  %734 = vadd.xlane.f32.xlu0 %v733_v37  ;;  %1377 = vpow2.f32 %v712_v7  ;;  %v1971_v40 = vpop.eup %1375 }
 0x357   :  { %746 = vadd.xlane.f32.xlu2 %v745_v29  ;;  %v730_v47 = vsel %vm130_vm0, %v1971_v40, 0.0 }
 0x359   :  { %v720_v39 = vpop.xlane.xlu0 %719 }
 0x35a   :  { %1379 = vrcp.f32 %v720_v39  ;;  %v642_v41 = vpop.xlane.xlu2 %641 }
 0x35b   :  { %v676_v36 = vsub.f32 %v1906_v42, %v642_v41  ;;  %1381 = vpow2.f32 %v714_v38 }
 0x35c   :  { %v1974_v43 = vpop.eup %1377 }
 0x35d   :  { %v698_v46 = vmul.f32 1.442695, %v676_v36  ;;  %v757_v48 = vsel %vm130_vm0, %v1974_v43, 0.0 }
 0x35e   :  { %731 = vadd.xlane.f32.xlu1 %v730_v47 }
 0x35f   :  { %1383 = vpow2.f32 %v698_v46  ;;  %758 = vadd.xlane.f32.xlu2 %v757_v48  ;;  %v1010_v46 = vld [vmem:[#allocation10] sm:$0xff] }
 0x360   :  { %v1380_v49 = vpop.eup %1379  ;;  %1041 = vmatpush.msrb.mxu2 %v1010_v46 }
 0x361   :  { %v782_v50 = vmul.f32 %v1380_v49, %v720_v39  ;;  %v645_v51 = vpop.xlane.xlu0 %644  ;;  %v1980_v53 = vpop.eup %1381 }
 0x362   :  { %v669_v52 = vpop.xlane.xlu2 %668  ;;  %v760_v58 = vsel %vm130_vm0, %v1980_v53, 0.0 }
 0x363   :  { %v798_v42 = vsub.f32 2.0, %v782_v50 }
 0x365   :  { %v1982_v55 = vpop.eup %1383  ;;  %v814_v57 = vmul.f32 %v1380_v49, %v798_v42 }
 0x366   :  { %v736_v59 = vsel %vm130_vm0, %v1982_v55, 0.0 }
 0x367   :  { %v830_v61 = vmul.f32 %v1908_v44, %v814_v57  ;;  %761 = vadd.xlane.f32.xlu2 %v760_v58  ;;  %737 = vadd.xlane.f32.xlu0 %v736_v59 }
 0x369   :  { %1272 = vmatmul.msk.f32.vlgmr.msra.gmra.mxu2 %vm130_vm0, %v830_v61  ;;  %v726_v63 = vpop.xlane.xlu0 %725 }
 0x36a   :  { %1385 = vrcp.f32 %v726_v63  ;;  %v723_v62 = vpop.xlane.xlu2 %722 }
 0x36b   :  { %1387 = vrcp.f32 %v723_v62 }
 0x370   :  { %v1386_v2 = vpop.eup %1385 }
 0x371   :  { %v1388_v3 = vpop.eup %1387  ;;  %v729_v5 = vpop.xlane.xlu0 %728  ;;  %v784_v10 = vmul.f32 %v1386_v2, %v726_v63 }
 0x372   :  { %v783_v0 = vmul.f32 %v1388_v3, %v723_v62  ;;  %v1351_v8 = vpop.permute.xlu2 %1350  ;;  %1389 = vrcp.f32 %v729_v5 }
 0x373   :  { %v1352_v9 = vunpack.i.l.bf16 %v1351_v8  ;;  %v1353_v13 = vunpack.i.h.bf16 %v1351_v8  ;;  %v800_v11 = vsub.f32 2.0, %v784_v10 }
 0x374   :  { %v799_v12 = vsub.f32 2.0, %v783_v0 }
 0x375   :  { %954 = vmatpush.msra.mxu0 %v1352_v9  ;;  %v816_v18 = vmul.f32 %v1386_v2, %v800_v11 }
 0x376   :  { %v815_v44 = vmul.f32 %v1388_v3, %v799_v12 }
 0x377   :  { %955 = vmatpush.msra.mxu0 %v1353_v13  ;;  %1345 = vrot.lane.b32.xlu1 %v1816_v28, %s1616_s30  ;;  %v832_v19 = vmul.f32 %v1934_v60, %v816_v18  ;;  %v677_v28 = vsub.f32 %v1921_v54, %v645_v51 }
 0x378   :  { %v831_v15 = vmul.f32 %v1932_v1, %v815_v44  ;;  %v1390_v16 = vpop.eup %1389  ;;  %v657_v1 = vpop.xlane.xlu1 %656 }
 0x379   :  { %v785_v20 = vmul.f32 %v1390_v16, %v729_v5  ;;  %v681_v17 = vsub.f32 %v1911_v45, %v657_v1  ;;  %v700_v25 = vmul.f32 1.442695, %v677_v28 }
 0x37a   :  { %1273 = vmatmul.msk.f32.gmra.mxu2 %vm130_vm0, %v831_v15 }
 0x37b   :  { %1355 = vrot.lane.b32.xlu0 %v1820_v31, %s1616_s30  ;;  %v801_v6 = vsub.f32 2.0, %v785_v20  ;;  %v680_v31 = vsub.f32 %v1894_v35, %v1958_v24  ;;  %v708_v26 = vmul.f32 1.442695, %v681_v17  ;;  %1391 = vpow2.f32 %v700_v25 }
 0x37d   :  { %v817_v23 = vmul.f32 %v1390_v16, %v801_v6  ;;  %v706_v14 = vmul.f32 1.442695, %v680_v31  ;;  %1393 = vpow2.f32 %v708_v26 }
 0x37f   :  { %v833_v22 = vmul.f32 %v1940_v4, %v817_v23  ;;  %1395 = vpow2.f32 %v706_v14  ;;  %v685_v4 = vsub.f32 %v1925_v56, %v669_v52 }
 0x381   :  { %v2004_v60 = vpop.eup %1391  ;;  %v716_v45 = vmul.f32 1.442695, %v685_v4 }
 0x382   :  { %1274 = vmatmul.msk.f32.gmra.mxu2 %vm130_vm0, %v832_v19  ;;  %v739_v7 = vsel %vm130_vm0, %v2004_v60, 0.0 }
 0x383   :  { %v2009_v54 = vpop.eup %1393  ;;  %1397 = vpow2.f32 %v716_v45 }
 0x384   :  { %v751_v33 = vsel %vm130_vm0, %v2009_v54, 0.0 }
 0x385   :  { %v2013_v35 = vpop.eup %1395 }
 0x386   :  { %v748_v24 = vsel %vm130_vm0, %v2013_v35, 0.0 }
 0x389   :  { %v2017_v34 = vpop.eup %1397 }
 0x38a   :  { %1275 = vmatmul.msk.f32.gmra.mxu2 %vm130_vm0, %v833_v22  ;;  %v763_v56 = vsel %vm130_vm0, %v2017_v34, 0.0 }
 0x3a1   :  { %740 = vadd.xlane.f32.xlu1 %v739_v7 }
 0x3a5   :  { %752 = vadd.xlane.f32.xlu0 %v751_v33 }
 0x3a9   :  { %749 = vadd.xlane.f32.xlu1 %v748_v24 }
 0x3b1   :  { %764 = vadd.xlane.f32.xlu1 %v763_v56 }
 0x3c1   :  { %v744_v37 = vpop.xlane.xlu0 %743 }
 0x3c2   :  { %1399 = vrcp.f32 %v744_v37 }
 0x3c8   :  { %v1400_v29 = vpop.eup %1399 }
 0x3c9   :  { %v790_v38 = vmul.f32 %v1400_v29, %v744_v37  ;;  %v756_v39 = vpop.xlane.xlu1 %755  ;;  %v735_v48 = vpop.xlane.xlu0 %734 }
 0x3ca   :  { %v747_v41 = vpop.xlane.xlu2 %746 }
 0x3cb   :  { %v806_v36 = vsub.f32 2.0, %v790_v38  ;;  %1401 = vrcp.f32 %v747_v41 }
 0x3cc   :  { %1403 = vrcp.f32 %v735_v48 }
 0x3cd   :  { %v822_v47 = vmul.f32 %v1400_v29, %v806_v36 }
 0x3cf   :  { %v838_v49 = vmul.f32 %v1950_v21, %v822_v47 }
 0x3d1   :  { %v732_v50 = vpop.xlane.xlu1 %731  ;;  %1280 = vmatmul.msk.f32.vlgmr.msra.gmra.mxu0 %vm130_vm0, %v838_v49  ;;  %v1402_v51 = vpop.eup %1401 }
 0x3d2   :  { %1405 = vrcp.f32 %v732_v50  ;;  %v791_v52 = vmul.f32 %v1402_v51, %v747_v41  ;;  %v1404_v57 = vpop.eup %1403  ;;  %v759_v8 = vpop.xlane.xlu2 %758 }
 0x3d3   :  { %v787_v2 = vmul.f32 %v1404_v57, %v735_v48 }
 0x3d4   :  { %v807_v42 = vsub.f32 2.0, %v791_v52 }
 0x3d5   :  { %v803_v5 = vsub.f32 2.0, %v787_v2  ;;  %v1012_v2 = vld [vmem:[#allocation10 + $0x10] sm:$0xff] }
 0x3d6   :  { %v823_v58 = vmul.f32 %v1402_v51, %v807_v42  ;;  %1123 = vmatpush.msrb.mxu0 %v1012_v2 }
 0x3d7   :  { %v819_v12 = vmul.f32 %v1404_v57, %v803_v5  ;;  %v1011_v5 = vld [vmem:[#allocation10 + $0x8] sm:$0xff] }
 0x3d8   :  { %v1406_v59 = vpop.eup %1405  ;;  %v839_v63 = vmul.f32 %v1962_v32, %v823_v58  ;;  %1082 = vmatpush.msrb.mxu3 %v1011_v5 }
 0x3d9   :  { %v786_v61 = vmul.f32 %v1406_v59, %v732_v50  ;;  %v835_v11 = vmul.f32 %v1955_v27, %v819_v12 }
 0x3da   :  { %v738_v62 = vpop.xlane.xlu0 %737  ;;  %1281 = vmatmul.msk.f32.gmra.mxu0 %vm130_vm0, %v839_v63  ;;  %v762_v16 = vpop.xlane.xlu2 %761 }
 0x3db   :  { %v802_v3 = vsub.f32 2.0, %v786_v61  ;;  %1407 = vrcp.f32 %v738_v62 }
 0x3dc   :  { %1409 = vrcp.f32 %v756_v39 }
 0x3dd   :  { %v818_v21 = vmul.f32 %v1406_v59, %v802_v3  ;;  %1411 = vrcp.f32 %v759_v8 }
 0x3de   :  { %1413 = vrcp.f32 %v762_v16 }
 0x3df   :  { %v834_v0 = vmul.f32 %v1971_v40, %v818_v21 }
 0x3e1   :  { %v1408_v9 = vpop.eup %1407  ;;  %1276 = vmatmul.msk.f32.vlgmr.msra.gmra.mxu3 %vm130_vm0, %v834_v0  ;;  %v1013_v0 = vld [vmem:[#allocation10 + $0x18] sm:$0xff] }
 0x3e2   :  { %v1410_v10 = vpop.eup %1409  ;;  %v788_v13 = vmul.f32 %v1408_v9, %v738_v62 }
 0x3e3   :  { %v794_v32 = vmul.f32 %v1410_v10, %v756_v39  ;;  %v1412_v20 = vpop.eup %1411 }
 0x3e4   :  { %v804_v44 = vsub.f32 2.0, %v788_v13  ;;  %v795_v28 = vmul.f32 %v1412_v20, %v759_v8  ;;  %v1414_v14 = vpop.eup %1413 }
 0x3e5   :  { %v810_v15 = vsub.f32 2.0, %v794_v32  ;;  %v796_v7 = vmul.f32 %v1414_v14, %v762_v16 }
 0x3e6   :  { %v820_v40 = vmul.f32 %v1408_v9, %v804_v44  ;;  %v811_v26 = vsub.f32 2.0, %v795_v28 }
 0x3e7   :  { %v826_v22 = vmul.f32 %v1410_v10, %v810_v15  ;;  %v812_v45 = vsub.f32 2.0, %v796_v7 }
 0x3e8   :  { %v836_v27 = vmul.f32 %v1982_v55, %v820_v40  ;;  %v827_v4 = vmul.f32 %v1412_v20, %v811_v26 }
 0x3e9   :  { %v1346_v18 = vpop.permute.xlu1 %1345  ;;  %1277 = vmatmul.msk.f32.gmra.mxu3 %vm130_vm0, %v835_v11  ;;  %v842_v31 = vmul.f32 %v1960_v30, %v826_v22  ;;  %v828_v24 = vmul.f32 %v1414_v14, %v812_v45 }
 0x3ea   :  { %v1347_v6 = vunpack.i.l.bf16 %v1346_v18  ;;  %v1348_v19 = vunpack.i.h.bf16 %v1346_v18  ;;  %v843_v33 = vmul.f32 %v1974_v43, %v827_v4 }
 0x3eb   :  { %v844_v30 = vmul.f32 %v1980_v53, %v828_v24 }
 0x3ec   :  { %v875_v23 = vpop.f32.mrf.mxu2  ;;  %993 = vmatpush.msra.mxu1 %v1347_v6 }
 0x3ed   :  { %v1356_v1 = vpop.permute.xlu0 %1355  ;;  %1288 = vmatmul.msk.f32.vlgmr.msrb.gmra.mxu2 %vm417_vm1, %v875_v23 }
 0x3ee   :  { %v1357_v17 = vunpack.i.l.bf16 %v1356_v1  ;;  %994 = vmatpush.msra.mxu1 %v1348_v19  ;;  %v1358_v25 = vunpack.i.h.bf16 %v1356_v1 }
 0x3f0   :  { %995 = vmatpush.msra.mxu1 %v1357_v17 }
 0x3f1   :  { %1278 = vmatmul.msk.f32.gmra.mxu3 %vm130_vm0, %v836_v27 }
 0x3f2   :  { %996 = vmatpush.msra.mxu1 %v1358_v25 }
 0x3f3   :  { %1284 = vmatmul.msk.f32.vlgmr.msra.gmra.mxu1 %vm130_vm0, %v842_v31 }
 0x3f4   :  { %1164 = vmatpush.msrb.mxu1 %v1013_v0 }
 0x3fb   :  { %1285 = vmatmul.msk.f32.gmra.mxu1 %vm130_vm0, %v843_v33 }
 0x3fd   :  { %v878_v55 = vpop.f32.mrf.mxu2 }
 0x3fe   :  { %1289 = vmatmul.msk.f32.gmra.mxu2 %vm417_vm1, %v878_v55 }
 0x403   :  { %1286 = vmatmul.msk.f32.gmra.mxu1 %vm130_vm0, %v844_v30 }
 0x405   :  { %v881_v56 = vpop.f32.mrf.mxu2 }
 0x406   :  { %1290 = vmatmul.msk.f32.gmra.mxu2 %vm417_vm1, %v881_v56 }
 0x40d   :  { %v884_v37 = vpop.f32.mrf.mxu2 }
 0x40e   :  { %1291 = vmatmul.msk.f32.gmra.mxu2 %vm417_vm1, %v884_v37 }
 0x414   :  { %v741_v29 = vpop.xlane.xlu1 %740 }
 0x415   :  { %1415 = vrcp.f32 %v741_v29 }
 0x418   :  { %v753_v38 = vpop.xlane.xlu0 %752 }
 0x419   :  { %1417 = vrcp.f32 %v753_v38 }
 0x41b   :  { %v1416_v43 = vpop.eup %1415 }
 0x41c   :  { %v789_v39 = vmul.f32 %v1416_v43, %v741_v29  ;;  %v750_v41 = vpop.xlane.xlu1 %749 }
 0x41d   :  { %1419 = vrcp.f32 %v750_v41 }
 0x41e   :  { %v805_v36 = vsub.f32 2.0, %v789_v39 }
 0x41f   :  { %v1418_v47 = vpop.eup %1417 }
 0x420   :  { %v821_v46 = vmul.f32 %v1416_v43, %v805_v36  ;;  %v793_v51 = vmul.f32 %v1418_v47, %v753_v38 }
 0x422   :  { %v837_v53 = vmul.f32 %v2004_v60, %v821_v46  ;;  %v809_v57 = vsub.f32 2.0, %v793_v51 }
 0x423   :  { %v1420_v48 = vpop.eup %1419 }
 0x424   :  { %v792_v49 = vmul.f32 %v1420_v48, %v750_v41  ;;  %1279 = vmatmul.msk.f32.gmra.mxu3 %vm130_vm0, %v837_v53  ;;  %v765_v50 = vpop.xlane.xlu1 %764  ;;  %v825_v63 = vmul.f32 %v1418_v47, %v809_v57 }
 0x425   :  { %1421 = vrcp.f32 %v765_v50 }
 0x426   :  { %v808_v52 = vsub.f32 2.0, %v792_v49  ;;  %v841_v3 = vmul.f32 %v2009_v54, %v825_v63 }
 0x428   :  { %v824_v42 = vmul.f32 %v1420_v48, %v808_v52 }
 0x42a   :  { %v840_v58 = vmul.f32 %v2013_v35, %v824_v42 }
 0x42b   :  { %v1422_v59 = vpop.eup %1421 }
 0x42c   :  { %v797_v61 = vmul.f32 %v1422_v59, %v765_v50  ;;  %1282 = vmatmul.msk.f32.gmra.mxu0 %vm130_vm0, %v840_v58 }
 0x42e   :  { %v813_v62 = vsub.f32 2.0, %v797_v61 }
 0x430   :  { %v829_v60 = vmul.f32 %v1422_v59, %v813_v62 }
 0x432   :  { %v845_v21 = vmul.f32 %v2017_v34, %v829_v60 }
 0x434   :  { %1283 = vmatmul.msk.f32.gmra.mxu0 %vm130_vm0, %v841_v3  ;;  %1287 = vmatmul.msk.f32.gmra.mxu1 %vm130_vm0, %v845_v21 }
 0x44e   :  { %v957_v35 = vpop.f32.mrf.mxu0 }
 0x44f   :  { %1296 = vmatmul.msk.f32.vlgmr.msrb.gmra.mxu0 %vm417_vm1, %v957_v35 }
 0x457   :  { %v960_v8 = vpop.f32.mrf.mxu0 }
 0x458   :  { %1297 = vmatmul.msk.f32.gmra.mxu0 %vm417_vm1, %v960_v8 }
 0x464   :  { %v916_v9 = vpop.f32.mrf.mxu3 }
 0x465   :  { %1292 = vmatmul.msk.f32.vlgmr.msrb.gmra.mxu3 %vm417_vm1, %v916_v9 }
 0x46c   :  { %v919_v54 = vpop.f32.mrf.mxu3 }
 0x46d   :  { %1293 = vmatmul.msk.f32.gmra.mxu3 %vm417_vm1, %v919_v54 }
 0x470   :  { %v998_v34 = vpop.f32.mrf.mxu1  ;;  %v1043_v16 = vpop.f32.mrf.mxu2 }
 0x471   :  { %1300 = vmatmul.msk.f32.vlgmr.msrb.gmra.mxu1 %vm417_vm1, %v998_v34  ;;  %v1178_v6 = vsel %vm130_vm0, %v1043_v16, 0.0 }
 0x474   :  { %v922_v10 = vpop.f32.mrf.mxu3 }
 0x475   :  { %1294 = vmatmul.msk.f32.gmra.mxu3 %vm417_vm1, %v922_v10 }
 0x478   :  { %v1001_v12 = vpop.f32.mrf.mxu1 }
 0x479   :  { %1301 = vmatmul.msk.f32.gmra.mxu1 %vm417_vm1, %v1001_v12 }
 0x480   :  { %v1004_v13 = vpop.f32.mrf.mxu1 }
 0x481   :  { %1302 = vmatmul.msk.f32.gmra.mxu1 %vm417_vm1, %v1004_v13  ;;  %v1046_v22 = vpop.f32.mrf.mxu2 }
 0x482   :  { %v1185_v31 = vsel %vm130_vm0, %v1046_v22, 0.0 }
 0x489   :  { %v1049_v30 = vpop.f32.mrf.mxu2 }
 0x48a   :  { %v1192_v29 = vsel %vm130_vm0, %v1049_v30, 0.0 }
 0x491   :  { %v1052_v47 = vpop.f32.mrf.mxu2 }
 0x492   :  { %v1199_v50 = vsel %vm130_vm0, %v1052_v47, 0.0 }
 0x4a7   :  { %v925_v32 = vpop.f32.mrf.mxu3 }
 0x4a8   :  { %1295 = vmatmul.msk.f32.gmra.mxu3 %vm417_vm1, %v925_v32 }
 0x4a9   :  { %v963_v44 = vpop.f32.mrf.mxu0 }
 0x4aa   :  { %1298 = vmatmul.msk.f32.gmra.mxu0 %vm417_vm1, %v963_v44 }
 0x4b1   :  { %v966_v11 = vpop.f32.mrf.mxu0  ;;  %v1007_v15 = vpop.f32.mrf.mxu1 }
 0x4b2   :  { %1299 = vmatmul.msk.f32.gmra.mxu0 %vm417_vm1, %v966_v11  ;;  %1303 = vmatmul.msk.f32.gmra.mxu1 %vm417_vm1, %v1007_v15 }
 0x4cc   :  { %v1125_v18 = vpop.f32.mrf.mxu0 }
 0x4cd   :  { %v1181_v23 = vsel %vm130_vm0, %v1125_v18, 0.0 }
 0x4d5   :  { %v1128_v14 = vpop.f32.mrf.mxu0 }
 0x4d6   :  { %v1188_v7 = vsel %vm130_vm0, %v1128_v14, 0.0 }
 0x4e8   :  { %v1084_v20 = vpop.f32.mrf.mxu3 }
 0x4e9   :  { %v1179_v40 = vsel %vm130_vm0, %v1084_v20, 0.0 }
 0x4ea   :  { %v1180_v19 = vadd.f32 %v1179_v40, %v1178_v6 }
 0x4ec   :  { %v1182_v1 = vadd.f32 %v1181_v23, %v1180_v19 }
 0x4ee   :  { %v1166_v28 = vpop.f32.mrf.mxu1 }
 0x4ef   :  { %v1183_v17 = vsel %vm130_vm0, %v1166_v28, 0.0 }
 0x4f0   :  { %v1184_v27 = vadd.f32 %v1183_v17, %v1182_v1  ;;  %v1087_v25 = vpop.f32.mrf.mxu3 }
 0x4f1   :  { %v1186_v26 = vsel %vm130_vm0, %v1087_v25, 0.0 }
 0x4f2   :  { %1206 = vst.msk [vmem:[#allocation13] sm:$0xff] %vm130_vm0, %v1184_v27  ;;  %v1187_v4 = vadd.f32 %v1186_v26, %v1185_v31 }
 0x4f4   :  { %v1189_v33 = vadd.f32 %v1188_v7, %v1187_v4 }
 0x4f6   :  { %v1169_v45 = vpop.f32.mrf.mxu1 }
 0x4f7   :  { %v1190_v24 = vsel %vm130_vm0, %v1169_v45, 0.0 }
 0x4f8   :  { %v1191_v55 = vadd.f32 %v1190_v24, %v1189_v33  ;;  %v1090_v56 = vpop.f32.mrf.mxu3 }
 0x4f9   :  { %v1193_v37 = vsel %vm130_vm0, %v1090_v56, 0.0 }
 0x4fa   :  { %1207 = vst.msk [vmem:[#allocation13 + $0x8] sm:$0xff] %vm130_vm0, %v1191_v55  ;;  %v1194_v38 = vadd.f32 %v1193_v37, %v1192_v29 }
 0x4fe   :  { %v1172_v43 = vpop.f32.mrf.mxu1 }
 0x4ff   :  { %v1197_v46 = vsel %vm130_vm0, %v1172_v43, 0.0 }
 0x527   :  { %v1131_v39 = vpop.f32.mrf.mxu0 }
 0x528   :  { %v1195_v41 = vsel %vm130_vm0, %v1131_v39, 0.0 }
 0x529   :  { %v1196_v36 = vadd.f32 %v1195_v41, %v1194_v38 }
 0x52b   :  { %v1198_v53 = vadd.f32 %v1197_v46, %v1196_v36  ;;  %v1093_v48 = vpop.f32.mrf.mxu3 }
 0x52c   :  { %v1200_v49 = vsel %vm130_vm0, %v1093_v48, 0.0 }
 0x52d   :  { %1208 = vst.msk [vmem:[#allocation13 + $0x10] sm:$0xff] %vm130_vm0, %v1198_v53  ;;  %v1201_v51 = vadd.f32 %v1200_v49, %v1199_v50 }
 0x52f   :  { %v1134_v52 = vpop.f32.mrf.mxu0  ;;  %v1175_v42 = vpop.f32.mrf.mxu1 }
 0x530   :  { %v1202_v57 = vsel %vm130_vm0, %v1134_v52, 0.0  ;;  %v1204_v59 = vsel %vm130_vm0, %v1175_v42, 0.0 }
 0x531   :  { %v1203_v58 = vadd.f32 %v1202_v57, %v1201_v51 }
 0x533   :  { %v1205_v61 = vadd.f32 %v1204_v59, %v1203_v58 }
 0x535   :  { %1209 = vst.msk [vmem:[#allocation13 + $0x18] sm:$0xff] %vm130_vm0, %v1205_v61 }
 0x536   :  { %1222 = dma.vmem_to_hbm [thread:$0]  %s1215_s8, 512, %s1217_s11, [#allocation4], %s1605_s1, %s1605_s1, %s1606_s12  }
 0x537   :  { %1599 = dma.done.wait [#allocation4], 512  }
 0x538   :  { %1600 = vsyncadd [#allocation4], 4294966784 }
 0x539   :  { %1227 = vsyncpa [#allocation3], 1 }
 0x53a   :  { %1228 = vsyncpa [#allocation6], 1 }
 0x53b   :  { %1229 = vsyncpa [#allocation9], 1 }
 0x53c   :  { %1230 = vsyncpa [#allocation12], 1 }
 0x53d   :  { %1231 = vsyncpa [#allocation4], 1 }

</bundles_post_ra>
